<compile_context>
chip_gen: v5e
topology: v5e:2x2
jax: 0.10.0
libtpu: 0.0.40
codegen_flags: <defaults>
</compile_context>

<pallas_src>
import jax
import jax.numpy as jnp
from jax.experimental import pallas as pl
from jax.experimental.pallas import tpu as pltpu


def _saliency_head_kernel(
    cls_ref, men_ref, ent_ref, mdis_ref,
    w1_ref, w1_rows_ref, b1_ref,
    w2_ref, b2_ref,
    w3_row_ref, b3_ref,
    out_ref,
    feat_ref,
):
    wdt = w1_ref.dtype                      # MXU compute dtype (bf16 by default)
    tn, d = cls_ref.shape

    cls = cls_ref[...]
    men = men_ref[...]
    ent = ent_ref[...]

    # Each shared product computed exactly once; the cm/ce dot-product features
    # are folded into the cls*men / cls*ent weight blocks in the wrapper, so no
    # cross-lane reductions are needed here.
    cls_men = cls * men
    cls_ent = cls * ent
    feats = (cls, men, ent, men * ent, cls_men, cls_ent)

    # Stage the 6 D-wide features as one lane-contiguous [TN, 6D] operand in
    # VMEM, then issue a single long-K MXU matmul (accumulation stays in the
    # MXU; no per-block f32 VPU adds, no per-block MXU ramp/drain).
    for k, f in enumerate(feats):
        feat_ref[:, k * d:(k + 1) * d] = f.astype(wdt)
    acc = jnp.dot(feat_ref[...], w1_ref[...], preferred_element_type=jnp.float32)

    # md / dis scalar features: rank-1 VPU broadcast-FMAs (a K=4 matmul would
    # waste an MXU pass).
    rows = w1_rows_ref[...]                                 # [2, D] (md, dis)
    acc = acc + mdis_ref[:, 0:1] * rows[0:1, :]
    acc = acc + mdis_ref[:, 1:2] * rows[1:2, :]

    # TODO(synk): train-mode Dropout(0.2) not implemented; eval semantics (identity).
    h1 = jnp.maximum(acc + b1_ref[...], 0.0)                # ReLU (+Dropout = id)

    h2 = jnp.dot(h1.astype(wdt), w2_ref[...],
                 preferred_element_type=jnp.float32) + b2_ref[...]
    h2 = jnp.maximum(h2, 0.0)                               # ReLU (+Dropout = id)

    # Final [D,1] projection as VPU multiply + cross-lane reduction; emit the
    # result lane-dense ([1, TN]) so the HBM writeback is unmasked stores
    # instead of TN strided 4-byte rows.
    out_vec = jnp.sum(h2 * w3_row_ref[...], axis=1)         # [TN]
    out_ref[...] = (out_vec.reshape(1, tn) + b3_ref[...]).astype(out_ref.dtype)


def saliency_classification_head(
    cls_tokens_repr, mentions_repr, entities_repr, md_scores, dis_scores,
    params, *, compute_dtype=jnp.bfloat16, tile_n=512,
):
    """Wrapper: folds/casts W1, packs md|dis, builds the batch-tiled pallas_call."""
    n, d = cls_tokens_repr.shape
    wsz = jnp.dtype(compute_dtype).itemsize

    # ---- weight preprocessing (once, outside the kernel) --------------------
    w1 = params["w1"]                                   # [9*D + 4, D]
    blk = w1[: 9 * d, :].reshape(9, d, d)
    rows = w1[9 * d:, :]                                # [4, D]: md, dis, cm, ce rows
    ones_col = jnp.ones((d, 1), w1.dtype)
    # Exact fold of the 3 difference blocks into the base blocks, plus the
    # cm/ce dot-product rows folded into the cls*men / cls*ent blocks.
    w1_blk = jnp.stack([
        blk[0] + blk[5] + blk[7],                       # cls
        blk[1] + blk[3] - blk[5],                       # mentions
        blk[2] - blk[3] - blk[7],                       # entities
        blk[4],                                         # men*ent
        blk[6] + ones_col * rows[2:3, :],               # cls*men  (+ cm fold)
        blk[8] + ones_col * rows[3:4, :],               # cls*ent  (+ ce fold)
    ])
    w1_flat = w1_blk.reshape(6 * d, d).astype(compute_dtype)   # single K=6D operand
    w1_rows = rows[0:2, :]                              # [2, D] md / dis rows (f32)
    b1 = params["b1"].reshape(1, d)
    w2 = params["w2"].astype(compute_dtype)             # [D, D]
    b2 = params["b2"].reshape(1, d)
    w3_row = params["w3"].reshape(1, d)                 # [D,1] -> [1,D] row (f32)
    b3 = params["b3"].reshape(1, 1)

    # Pack the two scalar score streams into one (N, 2) input (one DMA stream
    # and one lane-padded VMEM buffer instead of two).
    mdis = jnp.concatenate(
        [md_scores.reshape(n, 1), dis_scores.reshape(n, 1)], axis=1)

    # ---- batch tiling --------------------------------------------------------
    # Lane-dense output block requires TN % 128 == 0 whenever the grid has more
    # than one step (a single-step grid uses the full, possibly small, N).
    # Keep >= 2 grid steps when feasible so a v7x megacore can split the
    # "parallel" batch axis across both TensorCores.
    def round_up(x, m):
        return ((x + m - 1) // m) * m

    if n < 256:
        tn = n                                          # one full-extent tile
    else:
        tn = min(round_up(min(tile_n, n), 128), round_up(pl.cdiv(n, 2), 128))
    grid_n = pl.cdiv(n, tn)
    n_pad = grid_n * tn
    # Note: if n % tn != 0 the last tile reads padded (undefined) rows; rows are
    # independent and the padded output columns are sliced off below.

    act_spec = pl.BlockSpec((tn, d), lambda i: (i, 0))
    mdis_spec = pl.BlockSpec((tn, 2), lambda i: (i, 0))
    out_spec = pl.BlockSpec((1, tn), lambda i: (0, i))   # lane-dense writeback

    def resident(shape):     # constant index_map -> DMA'd once, reused across grid
        nd = len(shape)
        return pl.BlockSpec(shape, lambda i, _nd=nd: (0,) * _nd)

    # ---- VMEM budget ---------------------------------------------------------
    try:
        phys_vmem = int(pltpu.get_tpu_info().vmem_capacity_bytes)
    except Exception:
        phys_vmem = 64 << 20                            # assume v7x-sized VMEM
    vmem_cap = (phys_vmem * 3) // 4                     # ~48 MiB v7x / ~96 MiB v5e,v6e

    vmem_limit = int(
        2 * (3 * tn * d * 4 + tn * 128 * 4)             # double-buffered act tiles
        + 2 * 7 * d * d * wsz                           # w1_flat + w2 (assume 2 bufs)
        + tn * 6 * d * wsz                              # feature staging scratch
        + 6 * tn * d * 4                                # acc / h1 / h2 temporaries
        + 6 * 2 * 8 * max(d, 128) * 4                   # rows / biases / w3 (padded)
        + 4 * max(tn, 128) * 4                          # lane-dense output buffers
        + (12 << 20)                                    # headroom
    )
    vmem_limit = max(32 << 20, min(vmem_limit, vmem_cap))

    flops = 2 * n * d * (7 * d + 1) + 10 * n * d
    bytes_accessed = (3 * n * d * 4 + n * 2 * 4 + 7 * d * d * wsz
                      + 6 * d * 4 + n * 4)

    out2d = pl.pallas_call(
        _saliency_head_kernel,
        out_shape=jax.ShapeDtypeStruct((1, n_pad), jnp.float32),
        grid_spec=pltpu.PrefetchScalarGridSpec(
            num_scalar_prefetch=0,
            grid=(grid_n,),
            in_specs=[
                act_spec, act_spec, act_spec,   # cls / mentions / entities
                mdis_spec,                      # packed [md, dis]
                resident((6 * d, d)),           # folded layer-1 weight (K = 6D)
                resident((2, d)),               # md / dis rows (f32)
                resident((1, d)),               # b1
                resident((d, d)),               # w2
                resident((1, d)),               # b2
                resident((1, d)),               # w3 as a row (f32)
                resident((1, 1)),               # b3
            ],
            out_specs=out_spec,
            scratch_shapes=[pltpu.VMEM((tn, 6 * d), compute_dtype)],
        ),
        compiler_params=pltpu.CompilerParams(
            dimension_semantics=("parallel",),  # v7x: shard batch over 2 TCs
            vmem_limit_bytes=vmem_limit,
        ),
        cost_estimate=pl.CostEstimate(
            flops=int(flops), transcendentals=0,
            bytes_accessed=int(bytes_accessed)),
    )(
        cls_tokens_repr, mentions_repr, entities_repr, mdis,
        w1_flat, w1_rows, b1, w2, b2, w3_row, b3,
    )
    return out2d.reshape(-1)[:n].reshape(n, 1)


def saliency_classification_head_ref(
    cls_tokens_repr, mentions_repr, entities_repr, md_scores, dis_scores, params
):
    """Pure-JAX reference mirroring the PyTorch forward (eval mode)."""
    cm = jnp.sum(cls_tokens_repr * mentions_repr, axis=1, keepdims=True)
    ce = jnp.sum(cls_tokens_repr * entities_repr, axis=1, keepdims=True)
    feats = jnp.concatenate(
        [
            cls_tokens_repr, mentions_repr, entities_repr,
            mentions_repr - entities_repr, mentions_repr * entities_repr,
            cls_tokens_repr - mentions_repr, cls_tokens_repr * mentions_repr,
            cls_tokens_repr - entities_repr, cls_tokens_repr * entities_repr,
            md_scores, dis_scores, cm, ce,
        ],
        axis=1,
    )
    h = jnp.maximum(feats @ params["w1"] + params["b1"], 0.0)
    h = jnp.maximum(h @ params["w2"] + params["b2"], 0.0)
    return h @ params["w3"] + params["b3"]


def init_params(key, ctxt_output_dim):
    d = ctxt_output_dim
    in_dim = 9 * d + 4
    k1, k2, k3 = jax.random.split(key, 3)
    # Deterministic synthetic init (not a checkpoint load).
    return {
        "w1": jax.random.normal(k1, (in_dim, d), jnp.float32) * (1.0 / jnp.sqrt(in_dim)),
        "b1": jnp.zeros((d,), jnp.float32),
        "w2": jax.random.normal(k2, (d, d), jnp.float32) * (1.0 / jnp.sqrt(d)),
        "b2": jnp.zeros((d,), jnp.float32),
        "w3": jax.random.normal(k3, (d, 1), jnp.float32) * (1.0 / jnp.sqrt(d)),
        "b3": jnp.zeros((1,), jnp.float32),
    }


def _make_inputs(key, n, d):
    kc, km, ke, kmd, kds, kp = jax.random.split(key, 6)
    return (
        jax.random.normal(kc, (n, d), jnp.float32),
        jax.random.normal(km, (n, d), jnp.float32),
        jax.random.normal(ke, (n, d), jnp.float32),
        jax.random.normal(kmd, (n, 1), jnp.float32),
        jax.random.normal(kds, (n, 1), jnp.float32),
        init_params(kp, d),
    )


if __name__ == "__main__":
    key = jax.random.PRNGKey(0)
    k_small, k_big = jax.random.split(key, 2)

    # --- small single-tile check (module default would be D=768) -------------
    N, D = 8, 32
    cls_r, men_r, ent_r, md_s, dis_s, params = _make_inputs(k_small, N, D)
    ref = saliency_classification_head_ref(cls_r, men_r, ent_r, md_s, dis_s, params)

    # f32 compute path: verifies the weight folds / kernel structure exactly.
    out_f32 = jax.block_until_ready(saliency_classification_head(
        cls_r, men_r, ent_r, md_s, dis_s, params, compute_dtype=jnp.float32))
    assert out_f32.shape == (N, 1)
    assert jnp.allclose(out_f32, ref, atol=1e-4, rtol=1e-4), (out_f32, ref)

    # Default bf16 MXU path (f32 accumulation): looser tolerance for bf16.
    out_bf16 = jax.block_until_ready(saliency_classification_head(
        cls_r, men_r, ent_r, md_s, dis_s, params))
    assert out_bf16.shape == (N, 1)
    assert jnp.allclose(out_bf16, ref, atol=1e-1, rtol=1e-1), (out_bf16, ref)

    # --- multi-tile check: grid=2, lane-dense writeback, resident weights ----
    N2, D2 = 256, 128
    cls2, men2, ent2, md2, dis2, params2 = _make_inputs(k_big, N2, D2)
    ref2 = saliency_classification_head_ref(cls2, men2, ent2, md2, dis2, params2)
    out2 = jax.block_until_ready(saliency_classification_head(
        cls2, men2, ent2, md2, dis2, params2, compute_dtype=jnp.float32))
    assert out2.shape == (N2, 1)
    assert jnp.allclose(out2, ref2, atol=1e-2, rtol=1e-2), (out2, ref2)

    print("KERNEL_OK")
</pallas_src>

<mosaic_0001>
module attributes {stable_mosaic.version = 11 : i64} {
  func.func @_saliency_head_kernel(%arg0: i32, %arg1: memref<8x32xf32, #tpu.memory_space<vmem>>, %arg2: memref<8x32xf32, #tpu.memory_space<vmem>>, %arg3: memref<8x32xf32, #tpu.memory_space<vmem>>, %arg4: memref<8x2xf32, #tpu.memory_space<vmem>>, %arg5: memref<192x32xf32, #tpu.memory_space<vmem>>, %arg6: memref<2x32xf32, #tpu.memory_space<vmem>>, %arg7: memref<1x32xf32, #tpu.memory_space<vmem>>, %arg8: memref<32x32xf32, #tpu.memory_space<vmem>>, %arg9: memref<1x32xf32, #tpu.memory_space<vmem>>, %arg10: memref<1x32xf32, #tpu.memory_space<vmem>>, %arg11: memref<1x1xf32, #tpu.memory_space<vmem>>, %arg12: memref<1x8xf32, #tpu.memory_space<vmem>>, %arg13: memref<8x192xf32, #tpu.memory_space<vmem>>) attributes {dimension_semantics = [#tpu.dimension_semantics<parallel>], iteration_bounds = array<i64: 1>, scalar_prefetch = 0 : i64, scratch_operands = 1 : i64, tpu.core_type = #tpu.core_type<tc>, window_params = [{transform_indices = @transform_0, window_bounds = array<i64: 8, 32>}, {transform_indices = @transform_1, window_bounds = array<i64: 8, 32>}, {transform_indices = @transform_2, window_bounds = array<i64: 8, 32>}, {transform_indices = @transform_3, window_bounds = array<i64: 8, 2>}, {pipeline_mode = #tpu.pipeline_mode<synchronous>, transform_indices = @transform_4, window_bounds = array<i64: 192, 32>}, {pipeline_mode = #tpu.pipeline_mode<synchronous>, transform_indices = @transform_5, window_bounds = array<i64: 2, 32>}, {pipeline_mode = #tpu.pipeline_mode<synchronous>, transform_indices = @transform_6, window_bounds = array<i64: 1, 32>}, {pipeline_mode = #tpu.pipeline_mode<synchronous>, transform_indices = @transform_7, window_bounds = array<i64: 32, 32>}, {pipeline_mode = #tpu.pipeline_mode<synchronous>, transform_indices = @transform_8, window_bounds = array<i64: 1, 32>}, {pipeline_mode = #tpu.pipeline_mode<synchronous>, transform_indices = @transform_9, window_bounds = array<i64: 1, 32>}, {pipeline_mode = #tpu.pipeline_mode<synchronous>, transform_indices = @transform_10, window_bounds = array<i64: 1, 1>}, {transform_indices = @transform_11, window_bounds = array<i64: 1, 8>}]} {
    %c0 = arith.constant 0 : index
    %c0_0 = arith.constant 0 : index
    %0 = vector.load %arg1[%c0, %c0_0] : memref<8x32xf32, #tpu.memory_space<vmem>>, vector<8x32xf32>
    %c0_1 = arith.constant 0 : index
    %c0_2 = arith.constant 0 : index
    %1 = vector.load %arg2[%c0_1, %c0_2] : memref<8x32xf32, #tpu.memory_space<vmem>>, vector<8x32xf32>
    %c0_3 = arith.constant 0 : index
    %c0_4 = arith.constant 0 : index
    %2 = vector.load %arg3[%c0_3, %c0_4] : memref<8x32xf32, #tpu.memory_space<vmem>>, vector<8x32xf32>
    %3 = arith.mulf %0, %1 : vector<8x32xf32>
    %4 = arith.mulf %0, %2 : vector<8x32xf32>
    %5 = arith.mulf %1, %2 : vector<8x32xf32>
    %c0_5 = arith.constant 0 : index
    %c0_6 = arith.constant 0 : index
    %6 = vector.load %arg13[%c0_5, %c0_6] : memref<8x192xf32, #tpu.memory_space<vmem>>, vector<8x32xf32>
    tpu.vector_store %arg13[%c0_5, %c0_6], %0 {strides = array<i32>} : memref<8x192xf32, #tpu.memory_space<vmem>>, vector<8x32xf32>,
    %c0_7 = arith.constant 0 : index
    %c32 = arith.constant 32 : index
    %7 = vector.load %arg13[%c0_7, %c32] : memref<8x192xf32, #tpu.memory_space<vmem>>, vector<8x32xf32>
    tpu.vector_store %arg13[%c0_7, %c32], %1 {strides = array<i32>} : memref<8x192xf32, #tpu.memory_space<vmem>>, vector<8x32xf32>,
    %c0_8 = arith.constant 0 : index
    %c64 = arith.constant 64 : index
    %8 = vector.load %arg13[%c0_8, %c64] : memref<8x192xf32, #tpu.memory_space<vmem>>, vector<8x32xf32>
    tpu.vector_store %arg13[%c0_8, %c64], %2 {strides = array<i32>} : memref<8x192xf32, #tpu.memory_space<vmem>>, vector<8x32xf32>,
    %c0_9 = arith.constant 0 : index
    %c96 = arith.constant 96 : index
    %9 = vector.load %arg13[%c0_9, %c96] : memref<8x192xf32, #tpu.memory_space<vmem>>, vector<8x32xf32>
    tpu.vector_store %arg13[%c0_9, %c96], %5 {strides = array<i32>} : memref<8x192xf32, #tpu.memory_space<vmem>>, vector<8x32xf32>,
    %c0_10 = arith.constant 0 : index
    %c128 = arith.constant 128 : index
    %10 = vector.load %arg13[%c0_10, %c128] : memref<8x192xf32, #tpu.memory_space<vmem>>, vector<8x32xf32>
    tpu.vector_store %arg13[%c0_10, %c128], %3 {strides = array<i32>} : memref<8x192xf32, #tpu.memory_space<vmem>>, vector<8x32xf32>,
    %c0_11 = arith.constant 0 : index
    %c160 = arith.constant 160 : index
    %11 = vector.load %arg13[%c0_11, %c160] : memref<8x192xf32, #tpu.memory_space<vmem>>, vector<8x32xf32>
    tpu.vector_store %arg13[%c0_11, %c160], %4 {strides = array<i32>} : memref<8x192xf32, #tpu.memory_space<vmem>>, vector<8x32xf32>,
    %c0_12 = arith.constant 0 : index
    %c0_13 = arith.constant 0 : index
    %12 = vector.load %arg13[%c0_12, %c0_13] : memref<8x192xf32, #tpu.memory_space<vmem>>, vector<8x192xf32>
    %c0_14 = arith.constant 0 : index
    %c0_15 = arith.constant 0 : index
    %13 = vector.load %arg5[%c0_14, %c0_15] : memref<192x32xf32, #tpu.memory_space<vmem>>, vector<192x32xf32>
    %cst = arith.constant dense<0.000000e+00> : vector<8x32xf32>
    %14 = tpu.matmul %12, %13, %cst {dimension_numbers = #tpu.dot_dimension_numbers<[1], [0], [0], [1], [0, 0, 1, 1], [], []>} : vector<8x192xf32>, vector<192x32xf32>, vector<8x32xf32> -> vector<8x32xf32>
    %c0_16 = arith.constant 0 : index
    %c0_17 = arith.constant 0 : index
    %15 = vector.load %arg6[%c0_16, %c0_17] : memref<2x32xf32, #tpu.memory_space<vmem>>, vector<2x32xf32>
    %c0_18 = arith.constant 0 : index
    %c0_19 = arith.constant 0 : index
    %16 = vector.load %arg4[%c0_18, %c0_19] : memref<8x2xf32, #tpu.memory_space<vmem>>, vector<8x1xf32>
    %17 = vector.extract_strided_slice %15 {offsets = [0, 0], sizes = [1, 32], strides = [1, 1]} : vector<2x32xf32> to vector<1x32xf32>
    %18 = vector.broadcast %16 : vector<8x1xf32> to vector<8x32xf32>
    %19 = vector.broadcast %17 : vector<1x32xf32> to vector<8x32xf32>
    %20 = arith.mulf %18, %19 : vector<8x32xf32>
    %21 = arith.addf %14, %20 : vector<8x32xf32>
    %c0_20 = arith.constant 0 : index
    %c1 = arith.constant 1 : index
    %22 = vector.load %arg4[%c0_20, %c1] : memref<8x2xf32, #tpu.memory_space<vmem>>, vector<8x1xf32>
    %23 = vector.extract_strided_slice %15 {offsets = [1, 0], sizes = [1, 32], strides = [1, 1]} : vector<2x32xf32> to vector<1x32xf32>
    %24 = vector.broadcast %22 : vector<8x1xf32> to vector<8x32xf32>
    %25 = vector.broadcast %23 : vector<1x32xf32> to vector<8x32xf32>
    %26 = arith.mulf %24, %25 : vector<8x32xf32>
    %27 = arith.addf %21, %26 : vector<8x32xf32>
    %c0_21 = arith.constant 0 : index
    %c0_22 = arith.constant 0 : index
    %28 = vector.load %arg7[%c0_21, %c0_22] : memref<1x32xf32, #tpu.memory_space<vmem>>, vector<1x32xf32>
    %29 = vector.broadcast %28 : vector<1x32xf32> to vector<8x32xf32>
    %30 = arith.addf %27, %29 : vector<8x32xf32>
    %cst_23 = arith.constant 0.000000e+00 : f32
    %31 = vector.broadcast %cst_23 : f32 to vector<8x32xf32>
    %32 = arith.maximumf %30, %31 : vector<8x32xf32>
    %c0_24 = arith.constant 0 : index
    %c0_25 = arith.constant 0 : index
    %33 = vector.load %arg8[%c0_24, %c0_25] : memref<32x32xf32, #tpu.memory_space<vmem>>, vector<32x32xf32>
    %cst_26 = arith.constant dense<0.000000e+00> : vector<8x32xf32>
    %34 = tpu.matmul %32, %33, %cst_26 {dimension_numbers = #tpu.dot_dimension_numbers<[1], [0], [0], [1], [0, 0, 1, 1], [], []>} : vector<8x32xf32>, vector<32x32xf32>, vector<8x32xf32> -> vector<8x32xf32>
    %c0_27 = arith.constant 0 : index
    %c0_28 = arith.constant 0 : index
    %35 = vector.load %arg9[%c0_27, %c0_28] : memref<1x32xf32, #tpu.memory_space<vmem>>, vector<1x32xf32>
    %36 = vector.broadcast %35 : vector<1x32xf32> to vector<8x32xf32>
    %37 = arith.addf %34, %36 : vector<8x32xf32>
    %cst_29 = arith.constant 0.000000e+00 : f32
    %38 = vector.broadcast %cst_29 : f32 to vector<8x32xf32>
    %39 = arith.maximumf %37, %38 : vector<8x32xf32>
    %c0_30 = arith.constant 0 : index
    %c0_31 = arith.constant 0 : index
    %40 = vector.load %arg10[%c0_30, %c0_31] : memref<1x32xf32, #tpu.memory_space<vmem>>, vector<1x32xf32>
    %41 = vector.broadcast %40 : vector<1x32xf32> to vector<8x32xf32>
    %42 = arith.mulf %39, %41 : vector<8x32xf32>
    %cst_32 = arith.constant dense<0.000000e+00> : vector<8xf32>
    %43 = vector.multi_reduction <add>, %42, %cst_32 [1] : vector<8x32xf32> to vector<8xf32>
    %44 = vector.shape_cast %43 : vector<8xf32> to vector<1x8xf32>
    %c0_33 = arith.constant 0 : index
    %c0_34 = arith.constant 0 : index
    %45 = vector.load %arg11[%c0_33, %c0_34] : memref<1x1xf32, #tpu.memory_space<vmem>>, vector<1x1xf32>
    %46 = vector.broadcast %45 : vector<1x1xf32> to vector<1x8xf32>
    %47 = arith.addf %44, %46 : vector<1x8xf32>
    %c0_35 = arith.constant 0 : index
    %c0_36 = arith.constant 0 : index
    %48 = vector.load %arg12[%c0_35, %c0_36] : memref<1x8xf32, #tpu.memory_space<vmem>>, vector<1x8xf32>
    tpu.vector_store %arg12[%c0_35, %c0_36], %47 {strides = array<i32>} : memref<1x8xf32, #tpu.memory_space<vmem>>, vector<1x8xf32>,
    return
  }
  func.func @transform_0(%arg0: i32) -> (i32, i32) {
    %c0_i32 = arith.constant 0 : i32
    %c0_i32_0 = arith.constant 0 : i32
    return %arg0, %c0_i32 : i32, i32
  }
  func.func @transform_1(%arg0: i32) -> (i32, i32) {
    %c0_i32 = arith.constant 0 : i32
    %c0_i32_0 = arith.constant 0 : i32
    return %arg0, %c0_i32 : i32, i32
  }
  func.func @transform_2(%arg0: i32) -> (i32, i32) {
    %c0_i32 = arith.constant 0 : i32
    %c0_i32_0 = arith.constant 0 : i32
    return %arg0, %c0_i32 : i32, i32
  }
  func.func @transform_3(%arg0: i32) -> (i32, i32) {
    %c0_i32 = arith.constant 0 : i32
    %c0_i32_0 = arith.constant 0 : i32
    return %arg0, %c0_i32 : i32, i32
  }
  func.func @transform_4(%arg0: i32) -> (i32, i32) {
    %c0_i32 = arith.constant 0 : i32
    %c0_i32_0 = arith.constant 0 : i32
    %c0_i32_1 = arith.constant 0 : i32
    return %c0_i32, %c0_i32_0 : i32, i32
  }
  func.func @transform_5(%arg0: i32) -> (i32, i32) {
    %c0_i32 = arith.constant 0 : i32
    %c0_i32_0 = arith.constant 0 : i32
    %c0_i32_1 = arith.constant 0 : i32
    return %c0_i32, %c0_i32_0 : i32, i32
  }
  func.func @transform_6(%arg0: i32) -> (i32, i32) {
    %c0_i32 = arith.constant 0 : i32
    %c0_i32_0 = arith.constant 0 : i32
    %c0_i32_1 = arith.constant 0 : i32
    return %c0_i32, %c0_i32_0 : i32, i32
  }
  func.func @transform_7(%arg0: i32) -> (i32, i32) {
    %c0_i32 = arith.constant 0 : i32
    %c0_i32_0 = arith.constant 0 : i32
    %c0_i32_1 = arith.constant 0 : i32
    return %c0_i32, %c0_i32_0 : i32, i32
  }
  func.func @transform_8(%arg0: i32) -> (i32, i32) {
    %c0_i32 = arith.constant 0 : i32
    %c0_i32_0 = arith.constant 0 : i32
    %c0_i32_1 = arith.constant 0 : i32
    return %c0_i32, %c0_i32_0 : i32, i32
  }
  func.func @transform_9(%arg0: i32) -> (i32, i32) {
    %c0_i32 = arith.constant 0 : i32
    %c0_i32_0 = arith.constant 0 : i32
    %c0_i32_1 = arith.constant 0 : i32
    return %c0_i32, %c0_i32_0 : i32, i32
  }
  func.func @transform_10(%arg0: i32) -> (i32, i32) {
    %c0_i32 = arith.constant 0 : i32
    %c0_i32_0 = arith.constant 0 : i32
    %c0_i32_1 = arith.constant 0 : i32
    return %c0_i32, %c0_i32_0 : i32, i32
  }
  func.func @transform_11(%arg0: i32) -> (i32, i32) {
    %c0_i32 = arith.constant 0 : i32
    %c0_i32_0 = arith.constant 0 : i32
    return %c0_i32, %arg0 : i32, i32
  }
}

</mosaic_0001>

<bundles_post_ra>
// kernel: tpu_custom_call.1
= control target key start
LH: loop header
LB: loop body
LE: loop exit
PB: predicated region body
PF: predicated region fallthrough
CT: control target
= control target key end

     0   :  { %s460_s0 = inlined_call_operand.vmem [shape: f32[8,32], index: 0, kind: input, shape index: {}]   ;;  %s461_s1 = inlined_call_operand.vmem [shape: f32[8,32], index: 1, kind: input, shape index: {}]   ;;  %s462_s2 = inlined_call_operand.vmem [shape: f32[8,32], index: 2, kind: input, shape index: {}]   ;;  %s463_s3 = inlined_call_operand.vmem [shape: f32[8,2], index: 3, kind: input, shape index: {}]   ;;  %s464_s4 = inlined_call_operand.vmem [shape: f32[192,32], index: 4, kind: input, shape index: {}]   ;;  %s465_s5 = inlined_call_operand.vmem [shape: f32[2,32], index: 5, kind: input, shape index: {}]   ;;  %s466_s6 = inlined_call_operand.vmem [shape: f32[1,32], index: 6, kind: input, shape index: {}]   ;;  %s467_s7 = inlined_call_operand.vmem [shape: f32[32,32], index: 7, kind: input, shape index: {}]   ;;  %s468_s8 = inlined_call_operand.vmem [shape: f32[1,32], index: 8, kind: input, shape index: {}]   ;;  %s469_s9 = inlined_call_operand.vmem [shape: f32[1,32], index: 9, kind: input, shape index: {}]   ;;  %s470_s10 = inlined_call_operand.<no memory space> [shape: f32[1,1], index: 10, kind: input, shape index: {}]   ;;  %s471_s11 = inlined_call_operand.hbm [shape: f32[1,8], index: 11, kind: output, shape index: {}]  }
   0x1   :  { %v16_v0 = vstv %s470_s10 }
   0x2   :  { %17 = vst [vmem:[#allocation3] sm:$0x1] %v16_v0 }
   0x3   :  { %v42_v1 = vld [vmem:[%s461_s1] sm:$0xff]  ;;  %vm47_vm0 = vcmask 261120   ;;  %s276_s25 = smov 32   ;;  %v90_v6 = vld [vmem:[%s464_s4 + $0x78] sm:$0xff]  ;;  %v89_v7 = vld [vmem:[%s464_s4 + $0x70] sm:$0xff] }
   0x4   :  { %v41_v2 = vld [vmem:[%s460_s0] sm:$0xff]  ;;  %50 = vrot.lane.b32.xlu0 %v42_v1, %s276_s25  ;;  %112 = vmatpush.msra.mxu0 %v90_v6  ;;  %s277_s0 = smov 96   ;;  %v88_v8 = vld [vmem:[%s464_s4 + $0x68] sm:$0xff] }
   0x5   :  { %v43_v3 = vld [vmem:[%s462_s2] sm:$0xff]  ;;  %v44_v4 = vmul.f32 %v42_v1, %v41_v2  ;;  %48 = vst.msk [vmem:[#allocation2] sm:$0xff] %vm47_vm0, %v41_v2 }
   0x6   :  { %v46_v5 = vmul.f32 %v43_v3, %v42_v1  ;;  %113 = vmatpush.msra.mxu0 %v89_v7 }
   0x7   :  { %67 = vst.msk [vmem:[#allocation2 + $0x8] sm:$0xff] %vm47_vm0, %v44_v4 }
   0x8   :  { %62 = vrot.lane.b32.xlu1 %v46_v5, %s277_s0 }
   0x9   :  { %18 = vsyncpa [#allocation5], 0  ;;  %v87_v9 = vld [vmem:[%s464_s4 + $0x60] sm:$0xff]  ;;  %114 = vmatpush.msra.mxu0 %v88_v8  ;;  %v45_v10 = vmul.f32 %v43_v3, %v41_v2  ;;  %v86_v11 = vld [vmem:[%s464_s4 + $0x58] sm:$0xff]  ;;  %s278_s14 = smov 64   ;;  %v279_v32 = vmov 0   ;;  %v214_v4 = vlaneseq }
   0xa   :  { %v85_v12 = vld [vmem:[%s464_s4 + $0x50] sm:$0xff]  ;;  %v84_v13 = vld [vmem:[%s464_s4 + $0x48] sm:$0xff]  ;;  %v83_v14 = vld [vmem:[%s464_s4 + $0x40] sm:$0xff]  ;;  %244 = vset.pattern.permute.xlu2 %v279_v32  ;;  %246 = vset.pattern.permute.xlu0 %v279_v32  ;;  %v280_v33 = vmov 1   ;;  %vm53_vm1 = vcmask 523520   ;;  %vm59_vm2 = vcmask 785920  }
   0xb   :  { %115 = vmatpush.msra.mxu0 %v87_v9  ;;  %v82_v15 = vld [vmem:[%s464_s4 + $0x38] sm:$0xff]  ;;  %v81_v16 = vld [vmem:[%s464_s4 + $0x30] sm:$0xff]  ;;  %v80_v19 = vld [vmem:[%s464_s4 + $0x28] sm:$0xff]  ;;  %vm65_vm3 = vcmask 1048320   ;;  %vm108_vm4 = vcmask 523264   ;;  %v215_v6 = vand.u32 127, %v214_v4 }
   0xc   :  { %56 = vrot.lane.b32.xlu0 %v43_v3, %s278_s14  ;;  %v98_v17 = vld [vmem:[%s464_s4 + $0xb8] sm:$0xff]  ;;  %v97_v18 = vld [vmem:[%s464_s4 + $0xb0] sm:$0xff]  ;;  %v79_v20 = vld [vmem:[%s464_s4 + $0x20] sm:$0xff]  ;;  %s227_s23 = sshll.u32 %s471_s11, 4  ;;  %vm218_vm5 = vcmask 57344   ;;  %s228_s23 = int_to_ptr.hbm [resolvable:$true] %s227_s23 }
   0xd   :  { %116 = vmatpush.msra.mxu0 %v86_v11  ;;  %140 = vmatpush.msra.mxu1 %v98_v17  ;;  %v96_v21 = vld [vmem:[%s464_s4 + $0xa8] sm:$0xff]  ;;  %v78_v22 = vld [vmem:[%s464_s4 + $0x18] sm:$0xff]  ;;  %v95_v23 = vld [vmem:[%s464_s4 + $0xa0] sm:$0xff] }
   0xe   :  { %v77_v24 = vld [vmem:[%s464_s4 + $0x10] sm:$0xff]  ;;  %v94_v25 = vld [vmem:[%s464_s4 + $0x98] sm:$0xff]  ;;  %v76_v26 = vld [vmem:[%s464_s4 + $0x8] sm:$0xff] }
   0xf   :  { %117 = vmatpush.msra.mxu0 %v85_v12  ;;  %141 = vmatpush.msra.mxu1 %v97_v18  ;;  %v93_v27 = vld [vmem:[%s464_s4 + $0x90] sm:$0xff]  ;;  %v75_v28 = vld [vmem:[%s464_s4] sm:$0xff]  ;;  %v92_v29 = vld [vmem:[%s464_s4 + $0x88] sm:$0xff] }
  0x10   :  { %69 = vrot.lane.b32.xlu1 %v45_v10, %s276_s25  ;;  %v91_v30 = vld [vmem:[%s464_s4 + $0x80] sm:$0xff]  ;;  %v168_v40 = vld [vmem:[%s467_s7 + $0x18] sm:$0xff]  ;;  %v167_v41 = vld [vmem:[%s467_s7 + $0x10] sm:$0xff] }
  0x11   :  { %118 = vmatpush.msra.mxu0 %v84_v13  ;;  %142 = vmatpush.msra.mxu1 %v96_v21  ;;  %v100_v31 = vld [vmem:[%s463_s3] sm:$0xff]  ;;  %v166_v42 = vld [vmem:[%s467_s7 + $0x8] sm:$0xff]  ;;  %v205_v59 = vld [vmem:[#allocation3] sm:$0x1] }
  0x12   :  { %103 = vperm.xlu2 %244, %v100_v31   ;;  %188 = vmatpush.msra.mxu2 %v168_v40  ;;  %v165_v43 = vld [vmem:[%s467_s7] sm:$0xff] }
  0x13   :  { %119 = vmatpush.msra.mxu0 %v83_v14  ;;  %143 = vmatpush.msra.mxu1 %v95_v23  ;;  %v99_v45 = vld [vmem:[%s465_s5] sm:$0x3] }
  0x14   :  { %189 = vmatpush.msra.mxu2 %v167_v41  ;;  %v106_v46 = vperm.slane %v99_v45, 0  ;;  %v156_v47 = vperm.slane %v99_v45, 1  ;;  %v247_v55 = vld [vmem:[%s466_s6] ss:$0 sm:$0xff]  ;;  %208 = vperm.xlu0 %246, %v205_v59   ;;  %s281_s6 = smov [#allocation4]  }
  0x15   :  { %120 = vmatpush.msra.mxu0 %v82_v15  ;;  %144 = vmatpush.msra.mxu1 %v94_v25  ;;  %v248_v60 = vld [vmem:[%s468_s8] ss:$0 sm:$0xff]  ;;  %s225_s21 = sshll.u32 %s281_s6, 4  ;;  %s226_s21 = int_to_ptr.vmem [resolvable:$true] %s225_s21 }
  0x16   :  { %190 = vmatpush.msra.mxu2 %v166_v42  ;;  %v249_v63 = vld [vmem:[%s469_s9] ss:$0 sm:$0xff] }
  0x17   :  { %121 = vmatpush.msra.mxu0 %v81_v16  ;;  %145 = vmatpush.msra.mxu1 %v93_v27 }
  0x18   :  { %191 = vmatpush.msra.mxu2 %v165_v43 }
  0x19   :  { %122 = vmatpush.msra.mxu0 %v80_v19  ;;  %146 = vmatpush.msra.mxu1 %v92_v29 }
  0x1a   :  { %245 = vset.pattern.permute.xlu2 %v280_v33 }
  0x1b   :  { %123 = vmatpush.msra.mxu0 %v79_v20  ;;  %147 = vmatpush.msra.mxu1 %v91_v30 }
  0x1c   :  { %153 = vperm.xlu2 %245, %v100_v31  }
  0x1d   :  { %124 = vmatpush.msra.mxu0 %v78_v22 }
  0x1f   :  { %125 = vmatpush.msra.mxu0 %v77_v24 }
  0x21   :  { %126 = vmatpush.msra.mxu0 %v76_v26 }
  0x23   :  { %127 = vmatpush.msra.mxu0 %v75_v28 }
  0x6c   :  { %v104_v44 = vpop.permute.xlu2 %103 }
  0x6d   :  { %v107_v49 = vmul.f32 %v106_v46, %v104_v44 }
  0x76   :  { %v51_v34 = vpop.permute.xlu0 %50  ;;  %v154_v48 = vpop.permute.xlu2 %153 }
  0x77   :  { %54 = vst.msk [vmem:[#allocation2] sm:$0xff] %vm53_vm1, %v51_v34  ;;  %v157_v52 = vmul.f32 %v156_v47, %v154_v48 }
  0x7a   :  { %v63_v35 = vpop.permute.xlu1 %62 }
  0x7e   :  { %v57_v36 = vpop.permute.xlu0 %56 }
  0x7f   :  { %60 = vst.msk [vmem:[#allocation2] sm:$0xff] %vm59_vm2, %v57_v36 }
  0x80   :  { %66 = vst.msk [vmem:[#allocation2] sm:$0xff] %vm65_vm3, %v63_v35 }
  0x82   :  { %v70_v37 = vpop.permute.xlu1 %69 }
  0x83   :  { %72 = vst.msk [vmem:[#allocation2 + $0x8] sm:$0xff] %vm53_vm1, %v70_v37 }
  0x86   :  { %v209_v3 = vpop.permute.xlu0 %208 }
  0x87   :  { %v73_v38 = vld [vmem:[#allocation2] sm:$0xff]  ;;  %v211_v5 = vperm.slane %v209_v3, 0 }
  0x88   :  { %128 = vmatmul.f32.vlgmr.msra.gmra.mxu0 %v73_v38 }
  0x8a   :  { %v74_v39 = vld [vmem:[#allocation2 + $0x8] sm:$0xff] }
  0x8b   :  { %236 = vmatmul.msk.f32.vlgmr.msra.gmra.mxu1 %vm108_vm4, %v74_v39 }
 0x105   :  { %v129_v50 = vpop.f32.mrf.mxu0 }
 0x106   :  { %v130_v51 = vadd.f32 %v129_v50, %v107_v49 }
 0x108   :  { %v149_v53 = vpop.f32.mrf.mxu1 }
 0x109   :  { %v150_v54 = vadd.f32 %v149_v53, %v130_v51 }
 0x10b   :  { %v158_v56 = vadd.f32 %v157_v52, %v150_v54 }
 0x10d   :  { %v163_v57 = vadd.f32 %v247_v55, %v158_v56 }
 0x10f   :  { %v164_v58 = vmax.f32 %v163_v57, 0.0 }
 0x111   :  { %237 = vmatmul.msk.f32.vlgmr.msra.gmra.mxu2 %vm47_vm0, %v164_v58 }
 0x194   :  { %v193_v61 = vpop.f32.mrf.mxu2 }
 0x195   :  { %v194_v62 = vadd.f32 %v248_v60, %v193_v61 }
 0x197   :  { %v196_v0 = vmax.f32 %v194_v62, 0.0 }
 0x199   :  { %v201_v1 = vmul.f32 %v249_v63, %v196_v0 }
 0x19b   :  { %v202_v2 = vsel %vm47_vm0, %v201_v1, 0.0 }
 0x19c   :  { %203 = vadd.xlane.f32.xlu1 %v202_v2 }
 0x20f   :  { %v204_v7 = vpop.xlane.xlu1 %203 }
 0x210   :  { %v212_v8 = vadd.f32 %v211_v5, %v204_v7 }
 0x212   :  { %v216_v9 = vperm.slane %v212_v8, %v215_v6 }
 0x214   :  { %219 = vst.msk [vmem:[#allocation4] sm:$0x1] %vm218_vm5, %v216_v9 }
 0x215   :  { %230 = dma.vmem_to_hbm [thread:$0]  %s226_s21, 16, %s228_s23, [#allocation5]  }
 0x216   :  { %274 = dma.done.wait [#allocation5], 16  }
 0x217   :  { %275 = vsyncadd [#allocation5], 4294967280 }
 0x218   :  { %235 = vsyncpa [#allocation5], 1 }

</bundles_post_ra>
